<compile_context>
chip_gen: v7x
topology: tpu7x:2x2x1
jax: 0.10.0
libtpu: 0.0.40
codegen_flags: <defaults>
</compile_context>

<pallas_src>
import jax
import jax.numpy as jnp
from jax.experimental import pallas as pl
from jax.experimental.pallas import tpu as pltpu

EPS = 1e-5
_LANES = 128
_DEFAULT_TILE_PACKED_ROWS = 256           # 256 packed rows == 1024 original rows / step
_VMEM_LIMIT = 32 * 1024 * 1024            # safe scoped-VMEM cap on v5e / v6e / v7x


def _round_up(a, b):
    return ((a + b - 1) // b) * b


def _make_pass1_kernel(tile_mp, pack, c, m_true, needs_mask):
    """Pass 1: Linear (MXU), write y, accumulate per-lane sum / sum-of-squares."""

    def kernel(x_ref, w_ref, b_ref, y_ref, sum_ref, ssq_ref):
        i = pl.program_id(0)

        @pl.when(i == 0)
        def _():
            sum_ref[...] = jnp.zeros_like(sum_ref)
            ssq_ref[...] = jnp.zeros_like(ssq_ref)

        x = x_ref[...]
        # Block-diagonal weight keeps the lane axis 128-dense; f32 accumulation on MXU.
        y = jnp.dot(x, w_ref[...], preferred_element_type=jnp.float32) + b_ref[...]
        y_ref[...] = y.astype(y_ref.dtype)

        if needs_mask:
            # Zero out rows that are padding (M not a multiple of the tile*pack) so
            # they do not bias the batch statistics.
            rp = jax.lax.broadcasted_iota(jnp.int32, y.shape, 0)
            lane = jax.lax.broadcasted_iota(jnp.int32, y.shape, 1)
            orig_row = (i * tile_mp + rp) * pack + lane // c
            y = jnp.where(orig_row < m_true, y, 0.0)

        # Per-lane reductions on the MXU (ones @ y), keeping the VPU/XLU slots free.
        # All 8 rows of the result are identical; the wrapper uses row 0.
        ones8 = jnp.ones((8, tile_mp), jnp.float32)
        sum_ref[...] += jnp.dot(ones8, y, preferred_element_type=jnp.float32)
        ssq_ref[...] += jnp.dot(ones8, y * y, preferred_element_type=jnp.float32)

    return kernel


def _pass2_kernel(y_ref, scale_ref, shift_ref, o_ref):
    """Pass 2: fused normalize + affine + ReLU (single live tile temporary)."""
    o_ref[...] = jnp.maximum(
        y_ref[...] * scale_ref[...] + shift_ref[...], 0.0).astype(o_ref.dtype)


def add_conv_forward(x, weight, bias, gamma, beta,
                     tile_packed_rows=_DEFAULT_TILE_PACKED_ROWS):
    """x: (B, N, C); weight: (C_out, C_in) PyTorch Linear layout."""
    b_dim, n_dim, c = x.shape
    m = b_dim * n_dim

    # --- lane packing setup -------------------------------------------------
    if c >= _LANES:
        assert c % _LANES == 0, "channels >= 128 must be a multiple of 128"
        pack = 1
    else:
        # TODO(synk): channels that do not divide 128 would need zero-padding instead.
        assert _LANES % c == 0, "channels must divide 128"
        pack = _LANES // c
    cw = c * pack

    m4 = _round_up(m, pack)                 # rows rounded to a whole packed row
    m_pack = m4 // pack                     # packed rows
    tile_mp = min(int(tile_packed_rows), _round_up(m_pack, 8))
    m_pack_pad = _round_up(m_pack, tile_mp)
    grid_m = m_pack_pad // tile_mp
    needs_mask = (m_pack_pad * pack != m)

    # Packing reshapes are free (identical row-major layout).
    x_flat = x.reshape(m, c)
    if m4 != m:
        x_flat = jnp.pad(x_flat, ((0, m4 - m), (0, 0)))
    x_packed = x_flat.reshape(m_pack, cw)
    if m_pack_pad != m_pack:
        x_packed = jnp.pad(x_packed, ((0, m_pack_pad - m_pack), (0, 0)))

    # y_packed = x_packed @ blockdiag(W^T, ..., W^T);  bias tiled across lane groups.
    w_bd = jnp.kron(jnp.eye(pack, dtype=weight.dtype), weight.T).astype(x.dtype)
    b_tiled = jnp.tile(bias.astype(jnp.float32), pack).reshape(1, cw)

    # --- pass 1: Linear + stats accumulation --------------------------------
    pass1 = pl.pallas_call(
        _make_pass1_kernel(tile_mp, pack, c, m, needs_mask),
        grid=(grid_m,),
        in_specs=[
            pl.BlockSpec((tile_mp, cw), lambda i: (i, 0)),   # x tile (streamed)
            pl.BlockSpec((cw, cw), lambda i: (0, 0)),        # weight (resident)
            pl.BlockSpec((1, cw), lambda i: (0, 0)),         # bias (resident)
        ],
        out_specs=(
            pl.BlockSpec((tile_mp, cw), lambda i: (i, 0)),   # y tile (streamed)
            pl.BlockSpec((8, cw), lambda i: (0, 0)),         # sum accumulator
            pl.BlockSpec((8, cw), lambda i: (0, 0)),         # sumsq accumulator
        ),
        out_shape=(
            jax.ShapeDtypeStruct((m_pack_pad, cw), jnp.float32),
            jax.ShapeDtypeStruct((8, cw), jnp.float32),
            jax.ShapeDtypeStruct((8, cw), jnp.float32),
        ),
        compiler_params=pltpu.CompilerParams(
            dimension_semantics=("arbitrary",),              # stats accumulate over grid
            vmem_limit_bytes=_VMEM_LIMIT),
        cost_estimate=pl.CostEstimate(
            flops=2 * m_pack_pad * cw * cw + 4 * m_pack_pad * cw,
            transcendentals=0,
            bytes_accessed=4 * (2 * m_pack_pad * cw + cw * cw + 17 * cw)),
    )
    y_packed, lane_sum, lane_ssq = pass1(x_packed, w_bd, b_tiled)

    # --- tiny glue on (pack, C) statistics: fold lanes -> channels ----------
    ch_sum = lane_sum[0].reshape(pack, c).sum(axis=0)
    ch_ssq = lane_ssq[0].reshape(pack, c).sum(axis=0)
    inv_m = 1.0 / float(m)
    mean = ch_sum * inv_m
    var = jnp.maximum(ch_ssq * inv_m - mean * mean, 0.0)     # biased var (PyTorch BN)
    scale_c = gamma.astype(jnp.float32) * jax.lax.rsqrt(var + EPS)
    shift_c = beta.astype(jnp.float32) - mean * scale_c
    scale = jnp.tile(scale_c, pack).reshape(1, cw)
    shift = jnp.tile(shift_c, pack).reshape(1, cw)

    # --- pass 2: normalize + affine + ReLU, in place over the y buffer ------
    pass2 = pl.pallas_call(
        _pass2_kernel,
        grid=(grid_m,),
        in_specs=[
            pl.BlockSpec((tile_mp, cw), lambda i: (i, 0)),   # y tile (streamed)
            pl.BlockSpec((1, cw), lambda i: (0, 0)),         # scale (resident)
            pl.BlockSpec((1, cw), lambda i: (0, 0)),         # shift (resident)
        ],
        out_specs=pl.BlockSpec((tile_mp, cw), lambda i: (i, 0)),
        out_shape=jax.ShapeDtypeStruct((m_pack_pad, cw), jnp.float32),
        input_output_aliases={0: 0},                         # reuse y buffer in place
        compiler_params=pltpu.CompilerParams(
            dimension_semantics=("parallel",),               # shard across TCs (v7x)
            vmem_limit_bytes=_VMEM_LIMIT),
        cost_estimate=pl.CostEstimate(
            flops=3 * m_pack_pad * cw,
            transcendentals=0,
            bytes_accessed=4 * 2 * m_pack_pad * cw),
    )
    out_packed = pass2(y_packed, scale, shift)

    # Unpack lanes back to rows (free reshapes), drop padding, restore (B, N, C).
    out = out_packed[:m_pack].reshape(m4, c)[:m].reshape(b_dim, n_dim, c)
    return out.astype(x.dtype)


if __name__ == "__main__":
    # Small shapes consistent with the module: batch=2, npoints=16, channels=32.
    B, N, C = 2, 16, 32

    key = jax.random.PRNGKey(0)
    kx, kw, kb = jax.random.split(key, 3)

    x = jax.random.normal(kx, (B, N, C), dtype=jnp.float32)

    # Deterministic parameter init (shapes per nn.Linear(C, C) / nn.BatchNorm1d(C)).
    bound = 1.0 / jnp.sqrt(jnp.float32(C))
    weight = jax.random.uniform(kw, (C, C), minval=-bound, maxval=bound,
                                dtype=jnp.float32)
    bias = jax.random.uniform(kb, (C,), minval=-bound, maxval=bound,
                              dtype=jnp.float32)
    gamma = jnp.ones((C,), dtype=jnp.float32)   # BatchNorm1d weight
    beta = jnp.zeros((C,), dtype=jnp.float32)   # BatchNorm1d bias

    out = jax.jit(add_conv_forward)(x, weight, bias, gamma, beta)
    jax.block_until_ready(out)

    # Sanity check against a pure-JAX reference.
    y_ref = x.reshape(-1, C) @ weight.T + bias
    mean = y_ref.mean(axis=0, keepdims=True)
    var = ((y_ref - mean) ** 2).mean(axis=0, keepdims=True)
    ref = jnp.maximum((y_ref - mean) / jnp.sqrt(var + EPS) * gamma + beta, 0.0)
    ref = ref.reshape(B, N, C)
    assert jnp.allclose(out, ref, atol=1e-4, rtol=1e-4), float(
        jnp.max(jnp.abs(out - ref)))

    print("KERNEL_OK")
</pallas_src>

<mosaic_0001>
module attributes {stable_mosaic.version = 11 : i64} {
  func.func @kernel(%arg0: i32, %arg1: memref<8x128xf32, #tpu.memory_space<vmem>>, %arg2: memref<128x128xf32, #tpu.memory_space<vmem>>, %arg3: memref<1x128xf32, #tpu.memory_space<vmem>>, %arg4: memref<8x128xf32, #tpu.memory_space<vmem>>, %arg5: memref<8x128xf32, #tpu.memory_space<vmem>>, %arg6: memref<8x128xf32, #tpu.memory_space<vmem>>) attributes {dimension_semantics = [#tpu.dimension_semantics<arbitrary>], iteration_bounds = array<i64: 1>, scalar_prefetch = 0 : i64, scratch_operands = 0 : i64, tpu.core_type = #tpu.core_type<tc>, window_params = [{transform_indices = @transform_0, window_bounds = array<i64: 8, 128>}, {pipeline_mode = #tpu.pipeline_mode<synchronous>, transform_indices = @transform_1, window_bounds = array<i64: 128, 128>}, {pipeline_mode = #tpu.pipeline_mode<synchronous>, transform_indices = @transform_2, window_bounds = array<i64: 1, 128>}, {transform_indices = @transform_3, window_bounds = array<i64: 8, 128>}, {pipeline_mode = #tpu.pipeline_mode<synchronous>, transform_indices = @transform_4, window_bounds = array<i64: 8, 128>}, {pipeline_mode = #tpu.pipeline_mode<synchronous>, transform_indices = @transform_5, window_bounds = array<i64: 8, 128>}]} {
    %c0_i32 = arith.constant 0 : i32
    %0 = arith.cmpi eq, %arg0, %c0_i32 : i32
    %1 = arith.extui %0 : i1 to i32
    %c0_i32_0 = arith.constant 0 : i32
    %2 = arith.cmpi ne, %1, %c0_i32_0 : i32
    scf.if %2 {
      %cst_19 = arith.constant 0.000000e+00 : f32
      %20 = vector.broadcast %cst_19 : f32 to vector<8x128xf32>
      %c0_20 = arith.constant 0 : index
      %c0_21 = arith.constant 0 : index
      %21 = vector.load %arg5[%c0_20, %c0_21] : memref<8x128xf32, #tpu.memory_space<vmem>>, vector<8x128xf32>
      tpu.vector_store %arg5[%c0_20, %c0_21], %20 {strides = array<i32>} : memref<8x128xf32, #tpu.memory_space<vmem>>, vector<8x128xf32>,
      %cst_22 = arith.constant 0.000000e+00 : f32
      %22 = vector.broadcast %cst_22 : f32 to vector<8x128xf32>
      %c0_23 = arith.constant 0 : index
      %c0_24 = arith.constant 0 : index
      %23 = vector.load %arg6[%c0_23, %c0_24] : memref<8x128xf32, #tpu.memory_space<vmem>>, vector<8x128xf32>
      tpu.vector_store %arg6[%c0_23, %c0_24], %22 {strides = array<i32>} : memref<8x128xf32, #tpu.memory_space<vmem>>, vector<8x128xf32>,
    } else {
    }
    %c0 = arith.constant 0 : index
    %c0_1 = arith.constant 0 : index
    %3 = vector.load %arg1[%c0, %c0_1] : memref<8x128xf32, #tpu.memory_space<vmem>>, vector<8x128xf32>
    %c0_2 = arith.constant 0 : index
    %c0_3 = arith.constant 0 : index
    %4 = vector.load %arg2[%c0_2, %c0_3] : memref<128x128xf32, #tpu.memory_space<vmem>>, vector<128x128xf32>
    %cst = arith.constant dense<0.000000e+00> : vector<8x128xf32>
    %5 = tpu.matmul %3, %4, %cst {dimension_numbers = #tpu.dot_dimension_numbers<[1], [0], [0], [1], [0, 0, 1, 1], [], []>} : vector<8x128xf32>, vector<128x128xf32>, vector<8x128xf32> -> vector<8x128xf32>
    %c0_4 = arith.constant 0 : index
    %c0_5 = arith.constant 0 : index
    %6 = vector.load %arg3[%c0_4, %c0_5] : memref<1x128xf32, #tpu.memory_space<vmem>>, vector<1x128xf32>
    %7 = vector.broadcast %6 : vector<1x128xf32> to vector<8x128xf32>
    %8 = arith.addf %5, %7 : vector<8x128xf32>
    %c0_6 = arith.constant 0 : index
    %c0_7 = arith.constant 0 : index
    %9 = vector.load %arg4[%c0_6, %c0_7] : memref<8x128xf32, #tpu.memory_space<vmem>>, vector<8x128xf32>
    tpu.vector_store %arg4[%c0_6, %c0_7], %8 {strides = array<i32>} : memref<8x128xf32, #tpu.memory_space<vmem>>, vector<8x128xf32>,
    %cst_8 = arith.constant 1.000000e+00 : f32
    %10 = vector.broadcast %cst_8 : f32 to vector<8x8xf32>
    %c0_9 = arith.constant 0 : index
    %c0_10 = arith.constant 0 : index
    %11 = vector.load %arg5[%c0_9, %c0_10] : memref<8x128xf32, #tpu.memory_space<vmem>>, vector<8x128xf32>
    %cst_11 = arith.constant dense<0.000000e+00> : vector<8x128xf32>
    %12 = tpu.matmul %10, %8, %cst_11 {dimension_numbers = #tpu.dot_dimension_numbers<[1], [0], [0], [1], [0, 0, 1, 1], [], []>} : vector<8x8xf32>, vector<8x128xf32>, vector<8x128xf32> -> vector<8x128xf32>
    %13 = arith.addf %11, %12 : vector<8x128xf32>
    %c0_12 = arith.constant 0 : index
    %c0_13 = arith.constant 0 : index
    %14 = vector.load %arg5[%c0_12, %c0_13] : memref<8x128xf32, #tpu.memory_space<vmem>>, vector<8x128xf32>
    tpu.vector_store %arg5[%c0_12, %c0_13], %13 {strides = array<i32>} : memref<8x128xf32, #tpu.memory_space<vmem>>, vector<8x128xf32>,
    %c0_14 = arith.constant 0 : index
    %c0_15 = arith.constant 0 : index
    %15 = vector.load %arg6[%c0_14, %c0_15] : memref<8x128xf32, #tpu.memory_space<vmem>>, vector<8x128xf32>
    %16 = arith.mulf %8, %8 : vector<8x128xf32>
    %cst_16 = arith.constant dense<0.000000e+00> : vector<8x128xf32>
    %17 = tpu.matmul %10, %16, %cst_16 {dimension_numbers = #tpu.dot_dimension_numbers<[1], [0], [0], [1], [0, 0, 1, 1], [], []>} : vector<8x8xf32>, vector<8x128xf32>, vector<8x128xf32> -> vector<8x128xf32>
    %18 = arith.addf %15, %17 : vector<8x128xf32>
    %c0_17 = arith.constant 0 : index
    %c0_18 = arith.constant 0 : index
    %19 = vector.load %arg6[%c0_17, %c0_18] : memref<8x128xf32, #tpu.memory_space<vmem>>, vector<8x128xf32>
    tpu.vector_store %arg6[%c0_17, %c0_18], %18 {strides = array<i32>} : memref<8x128xf32, #tpu.memory_space<vmem>>, vector<8x128xf32>,
    return
  }
  func.func @transform_0(%arg0: i32) -> (i32, i32) {
    %c0_i32 = arith.constant 0 : i32
    %c0_i32_0 = arith.constant 0 : i32
    return %arg0, %c0_i32 : i32, i32
  }
  func.func @transform_1(%arg0: i32) -> (i32, i32) {
    %c0_i32 = arith.constant 0 : i32
    %c0_i32_0 = arith.constant 0 : i32
    %c0_i32_1 = arith.constant 0 : i32
    return %c0_i32, %c0_i32_0 : i32, i32
  }
  func.func @transform_2(%arg0: i32) -> (i32, i32) {
    %c0_i32 = arith.constant 0 : i32
    %c0_i32_0 = arith.constant 0 : i32
    %c0_i32_1 = arith.constant 0 : i32
    return %c0_i32, %c0_i32_0 : i32, i32
  }
  func.func @transform_3(%arg0: i32) -> (i32, i32) {
    %c0_i32 = arith.constant 0 : i32
    %c0_i32_0 = arith.constant 0 : i32
    return %arg0, %c0_i32 : i32, i32
  }
  func.func @transform_4(%arg0: i32) -> (i32, i32) {
    %c0_i32 = arith.constant 0 : i32
    %c0_i32_0 = arith.constant 0 : i32
    %c0_i32_1 = arith.constant 0 : i32
    return %c0_i32, %c0_i32_0 : i32, i32
  }
  func.func @transform_5(%arg0: i32) -> (i32, i32) {
    %c0_i32 = arith.constant 0 : i32
    %c0_i32_0 = arith.constant 0 : i32
    %c0_i32_1 = arith.constant 0 : i32
    return %c0_i32, %c0_i32_0 : i32, i32
  }
}

module attributes {stable_mosaic.version = 11 : i64} {
  func.func @_pass2_kernel(%arg0: i32, %arg1: memref<8x128xf32, #tpu.memory_space<vmem>>, %arg2: memref<1x128xf32, #tpu.memory_space<vmem>>, %arg3: memref<1x128xf32, #tpu.memory_space<vmem>>, %arg4: memref<8x128xf32, #tpu.memory_space<vmem>>) attributes {dimension_semantics = [#tpu.dimension_semantics<parallel>], iteration_bounds = array<i64: 1>, scalar_prefetch = 0 : i64, scratch_operands = 0 : i64, tpu.core_type = #tpu.core_type<tc>, window_params = [{transform_indices = @transform_0, window_bounds = array<i64: 8, 128>}, {pipeline_mode = #tpu.pipeline_mode<synchronous>, transform_indices = @transform_1, window_bounds = array<i64: 1, 128>}, {pipeline_mode = #tpu.pipeline_mode<synchronous>, transform_indices = @transform_2, window_bounds = array<i64: 1, 128>}, {transform_indices = @transform_3, window_bounds = array<i64: 8, 128>}]} {
    %c0 = arith.constant 0 : index
    %c0_0 = arith.constant 0 : index
    %0 = vector.load %arg1[%c0, %c0_0] : memref<8x128xf32, #tpu.memory_space<vmem>>, vector<8x128xf32>
    %c0_1 = arith.constant 0 : index
    %c0_2 = arith.constant 0 : index
    %1 = vector.load %arg2[%c0_1, %c0_2] : memref<1x128xf32, #tpu.memory_space<vmem>>, vector<1x128xf32>
    %2 = vector.broadcast %1 : vector<1x128xf32> to vector<8x128xf32>
    %3 = arith.mulf %0, %2 : vector<8x128xf32>
    %c0_3 = arith.constant 0 : index
    %c0_4 = arith.constant 0 : index
    %4 = vector.load %arg3[%c0_3, %c0_4] : memref<1x128xf32, #tpu.memory_space<vmem>>, vector<1x128xf32>
    %5 = vector.broadcast %4 : vector<1x128xf32> to vector<8x128xf32>
    %6 = arith.addf %3, %5 : vector<8x128xf32>
    %cst = arith.constant 0.000000e+00 : f32
    %7 = vector.broadcast %cst : f32 to vector<8x128xf32>
    %8 = arith.maximumf %6, %7 : vector<8x128xf32>
    %c0_5 = arith.constant 0 : index
    %c0_6 = arith.constant 0 : index
    %9 = vector.load %arg4[%c0_5, %c0_6] : memref<8x128xf32, #tpu.memory_space<vmem>>, vector<8x128xf32>
    tpu.vector_store %arg4[%c0_5, %c0_6], %8 {strides = array<i32>} : memref<8x128xf32, #tpu.memory_space<vmem>>, vector<8x128xf32>,
    return
  }
  func.func @transform_0(%arg0: i32) -> (i32, i32) {
    %c0_i32 = arith.constant 0 : i32
    %c0_i32_0 = arith.constant 0 : i32
    return %arg0, %c0_i32 : i32, i32
  }
  func.func @transform_1(%arg0: i32) -> (i32, i32) {
    %c0_i32 = arith.constant 0 : i32
    %c0_i32_0 = arith.constant 0 : i32
    %c0_i32_1 = arith.constant 0 : i32
    return %c0_i32, %c0_i32_0 : i32, i32
  }
  func.func @transform_2(%arg0: i32) -> (i32, i32) {
    %c0_i32 = arith.constant 0 : i32
    %c0_i32_0 = arith.constant 0 : i32
    %c0_i32_1 = arith.constant 0 : i32
    return %c0_i32, %c0_i32_0 : i32, i32
  }
  func.func @transform_3(%arg0: i32) -> (i32, i32) {
    %c0_i32 = arith.constant 0 : i32
    %c0_i32_0 = arith.constant 0 : i32
    return %arg0, %c0_i32 : i32, i32
  }
}

</mosaic_0001>

<bundles_post_ra>
// kernel: tile.18
= control target key start
LH: loop header
LB: loop body
LE: loop exit
PB: predicated region body
PF: predicated region fallthrough
CT: control target
= control target key end

     0   :  { %s22_s0 = inlined_call_operand.vmem [shape: f32[32], index: 0, kind: input, shape index: {}]   ;;  %s23_s1 = inlined_call_operand.vmem [shape: f32[4,32], index: 1, kind: output, shape index: {}]  }
   0x1   :  { %v4_v0 = vld [vmem:[%s22_s0] ss:$0 sm:$0xff] }
   0x2   :  { %5 = vst [vmem:[%s23_s1] sm:$0xf] %v4_v0 }

// kernel: tile.19
= control target key start
LH: loop header
LB: loop body
LE: loop exit
PB: predicated region body
PF: predicated region fallthrough
CT: control target
= control target key end

     0   :  { %vm7_vm0 = vcmask 261120   ;;  %s37_s8 = smov 32   ;;  %s38_s9 = smov 64   ;;  %vm13_vm1 = vcmask 1048320   ;;  %vm19_vm2 = vcmask 785920   ;;  %vm25_vm3 = vcmask 523520   ;;  %s55_s0 = inlined_call_operand.vmem [shape: f32[4,32], index: 0, kind: input, shape index: {}]   ;;  %s56_s1 = inlined_call_operand.vmem [shape: f32[1,128], index: 1, kind: output, shape index: {}]  }
   0x1   :  { %v4_v0 = vld [vmem:[%s55_s0] sm:$0xf]  ;;  %s36_s0 = smov 96  }
   0x2   :  { %5 = vst [vmem:[#allocation1] sm:$0xf] %v4_v0 }
   0x9   :  { %v10_v1 = vld [vmem:[#allocation1 + $0x3] sm:$0x1]   ;;  %v22_v2 = vld [vmem:[#allocation1 + $0x1] sm:$0x1]   ;;  %v6_v3 = vld [vmem:[#allocation1] sm:$0x1]  }
   0xa   :  { %11 = vrot.lane.b32.xlu0 %v10_v1, %s36_s0  ;;  %23 = vrot.lane.b32.xlu1 %v22_v2, %s37_s8  ;;  %v16_v4 = vld [vmem:[#allocation1 + $0x2] sm:$0x1]   ;;  %8 = vst.msk [vmem:[#allocation0] sm:$0x1] %vm7_vm0, %v6_v3  }
   0xe   :  { %17 = vrot.lane.b32.xlu0 %v16_v4, %s38_s9 }
  0x7c   :  { %v12_v5 = vpop.permute.xlu0 %11   ;;  %v24_v6 = vpop.permute.xlu1 %23  }
  0x7d   :  { %14 = vst.msk [vmem:[#allocation0] sm:$0x1] %vm13_vm1, %v12_v5  }
  0x80   :  { %v18_v7 = vpop.permute.xlu0 %17  }
  0x81   :  { %20 = vst.msk [vmem:[#allocation0] sm:$0x1] %vm19_vm2, %v18_v7  }
  0x82   :  { %26 = vst.msk [vmem:[#allocation0] sm:$0x1] %vm25_vm3, %v24_v6  }
  0x89   :  { %v30_v8 = vld [vmem:[#allocation0] sm:$0x1] }
  0x8a   :  { %32 = vst [vmem:[%s56_s1] sm:$0x1] %v30_v8 }

// kernel: squeeze.2
= control target key start
LH: loop header
LB: loop body
LE: loop exit
PB: predicated region body
PF: predicated region fallthrough
CT: control target
= control target key end

     0   :  { %s37_s8 = smov 32   ;;  %vm7_vm0 = vcmask 261120   ;;  %s38_s9 = smov 64   ;;  %s55_s0 = inlined_call_operand.vmem [shape: f32[128], index: 0, kind: input, shape index: {}]   ;;  %s56_s1 = inlined_call_operand.vmem [shape: f32[4,32], index: 1, kind: output, shape index: {}]  }
   0x1   :  { %v4_v0 = vld [vmem:[%s55_s0] sm:$0x1]  ;;  %s36_s0 = smov 96  }
   0x2   :  { %5 = vst [vmem:[#allocation1] sm:$0x1] %v4_v0 }
   0x9   :  { %v9_v1 = vld [vmem:[#allocation1] sm:$0x1]  }
   0xa   :  { %v21_v2 = vld [vmem:[#allocation1] sm:$0x1]   ;;  %10 = vrot.lane.b32.xlu0 %v9_v1, %s36_s0 }
   0xb   :  { %22 = vrot.lane.b32.xlu1 %v21_v2, %s37_s8  ;;  %v6_v3 = vld [vmem:[#allocation1] sm:$0x1]  }
   0xc   :  { %v15_v4 = vld [vmem:[#allocation1] sm:$0x1]   ;;  %8 = vst.msk [vmem:[#allocation0] sm:$0x1] %vm7_vm0, %v6_v3  }
   0xe   :  { %16 = vrot.lane.b32.xlu0 %v15_v4, %s38_s9 }
  0x7c   :  { %v11_v5 = vpop.permute.xlu0 %10  }
  0x7d   :  { %v23_v6 = vpop.permute.xlu1 %22   ;;  %14 = vst.msk [vmem:[#allocation0 + $0x1] sm:$0x1] %vm7_vm0, %v11_v5  }
  0x7e   :  { %26 = vst.msk [vmem:[#allocation0 + $0x3] sm:$0x1] %vm7_vm0, %v23_v6  }
  0x80   :  { %v17_v7 = vpop.permute.xlu0 %16  }
  0x81   :  { %20 = vst.msk [vmem:[#allocation0 + $0x2] sm:$0x1] %vm7_vm0, %v17_v7  }
  0x88   :  { %v30_v8 = vld [vmem:[#allocation0] sm:$0xf] }
  0x89   :  { %32 = vst [vmem:[%s56_s1] sm:$0xf] %v30_v8 }

</bundles_post_ra>
